<compile_context>
chip_gen: v5e
topology: v5e:2x2
jax: 0.10.0
libtpu: 0.0.40
codegen_flags: <defaults>
</compile_context>

<pallas_src>
import functools

import numpy as np
import jax
import jax.numpy as jnp
from jax import lax
from jax.experimental import pallas as pl
from jax.experimental.pallas import tpu as pltpu


def _round_up(n, m):
    return ((n + m - 1) // m) * m


def _resident_spec(block_shape, index_map):
    # Constant-index blocks (weights / biases): single-buffer them — double
    # buffering a block that is never re-fetched is pure VMEM waste.
    try:
        return pl.BlockSpec(block_shape, index_map, pipeline_mode=pl.Buffered(1))
    except (TypeError, AttributeError):      # older JAX without pipeline_mode
        return pl.BlockSpec(block_shape, index_map)


# ----------------------------------------------------------------------------
# Pallas kernel: projection head  (Linear -> ReLU -> Linear), row-tiled
# ----------------------------------------------------------------------------
def _proj_head_kernel(z_ref, w1_ref, b1_ref, w2_ref, b2_ref, o_ref):
    # One row-block of activations; weights/biases stay resident in VMEM.
    # MXU operands keep the streamed compute dtype (bf16 by default); the
    # accumulate / bias-add path is f32.
    h = jnp.dot(z_ref[...], w1_ref[...], preferred_element_type=jnp.float32)
    h = jnp.maximum(h + b1_ref[...], 0.0)
    out = jnp.dot(h.astype(w2_ref.dtype), w2_ref[...],
                  preferred_element_type=jnp.float32)
    o_ref[...] = (out + b2_ref[...]).astype(o_ref.dtype)


def proj_head(z, w1, b1, w2, b2, *, block_rows=256, compute_dtype=jnp.bfloat16):
    """Projection head.  z: [B, Din]; w1: [Din, H] (pre-transposed from the
    torch (out,in) layout); b1: [1, H]; w2: [H, H]; b2: [1, H]."""
    B, Din = z.shape
    H = w1.shape[1]
    Dp = _round_up(Din, 128)                 # lane-dense contraction dim
    Hp = _round_up(H, 128)                   # lane-dense output dim
    TB = min(block_rows, _round_up(B, 8))
    Bp = _round_up(B, TB)

    zp = jnp.pad(z, ((0, Bp - B), (0, Dp - Din))).astype(compute_dtype)
    w1p = jnp.pad(w1, ((0, Dp - Din), (0, Hp - H))).astype(compute_dtype)
    w2p = jnp.pad(w2, ((0, Hp - H), (0, Hp - H))).astype(compute_dtype)
    b1p = jnp.pad(b1, ((0, 0), (0, Hp - H))).astype(jnp.float32)
    b2p = jnp.pad(b2, ((0, 0), (0, Hp - H))).astype(jnp.float32)

    out = pl.pallas_call(
        _proj_head_kernel,
        out_shape=jax.ShapeDtypeStruct((Bp, Hp), z.dtype),
        grid=(Bp // TB,),
        in_specs=[
            pl.BlockSpec((TB, Dp), lambda i: (i, 0)),     # activation row stream
            _resident_spec((Dp, Hp), lambda i: (0, 0)),   # W1 resident, 1-buffered
            _resident_spec((1, Hp), lambda i: (0, 0)),    # b1
            _resident_spec((Hp, Hp), lambda i: (0, 0)),   # W2 resident, 1-buffered
            _resident_spec((1, Hp), lambda i: (0, 0)),    # b2
        ],
        out_specs=pl.BlockSpec((TB, Hp), lambda i: (i, 0)),
        compiler_params=pltpu.CompilerParams(
            dimension_semantics=("parallel",),            # rows split across TCs
            vmem_limit_bytes=48 * 1024 * 1024),           # > 16/32 MiB defaults
    )(zp, w1p, b1p, w2p, b2p)
    return out[:B, :H]


# ----------------------------------------------------------------------------
# Pallas kernel: _GInfoMinMax.calc_loss (streaming, tiled NT-Xent, per-row terms)
# ----------------------------------------------------------------------------
def _ntxent_kernel(q_ref, k_ref, cmask_ref, rmask_ref, o_ref, rs_ref, pos_ref,
                   *, masked):
    i = pl.program_id(1)          # query row-block
    j = pl.program_id(2)          # key row-block (reduction axis, innermost)
    nj = pl.num_programs(2)
    tq = q_ref.shape[0]
    tk = k_ref.shape[0]

    @pl.when(j == 0)
    def _init():
        rs_ref[...] = jnp.zeros_like(rs_ref)
        pos_ref[...] = jnp.zeros_like(pos_ref)

    # (tq, tk) tile of exp(sim / T).  Operands are pre-normalized with
    # 1/sqrt(T) folded into both sides, so the dot gives the full logit.
    s = lax.dot_general(q_ref[...], k_ref[...], (((1,), (1,)), ((), ())),
                        preferred_element_type=jnp.float32)
    e = jnp.exp(s)
    if masked:
        e = e * cmask_ref[...]                       # zero padded key columns
    # Row sums.  If a bundle dump ever shows the XLU (cross-lane reduce) as the
    # binding slot, swap this for an MXU matvec  e @ ones((tk, 1)); an
    # EUP (exp) bound is only helped by larger tiles / megacore.
    rs_ref[...] += jnp.sum(e, axis=1, keepdims=True)

    # Positives: harvest the diagonal of the global similarity matrix from the
    # tiles that contain it (key blocks overlapping this query block's rows).
    # pos stays bit-consistent with its contribution to rs, so rs - pos is an
    # exact off-diagonal sum (always > 0 for B >= 2).
    row0 = i * tq
    col0 = j * tk

    @pl.when((col0 < row0 + tq) & (col0 + tk > row0))
    def _diag():
        rows = row0 + lax.broadcasted_iota(jnp.int32, (tq, tk), 0)
        cols = col0 + lax.broadcasted_iota(jnp.int32, (tq, tk), 1)
        pos_ref[...] += jnp.sum(jnp.where(rows == cols, e, 0.0),
                                axis=1, keepdims=True)

    @pl.when(j == nj - 1)
    def _done():
        pos = pos_ref[...]
        denom = rs_ref[...] - pos                    # exact off-diagonal sum
        if masked:
            rmask = rmask_ref[...]
            # padded rows: pos == 0, denom == #valid cols -> keep the logs
            # finite, then zero the term (no NaNs generated).
            term = (jnp.log(denom) - jnp.log(pos + (1.0 - rmask))) * rmask
        else:
            term = jnp.log(denom) - jnp.log(pos)
        o_ref[...] = term


def calc_loss(x, x_aug, temperature=0.2, sym=True, *, block_q=512, block_k=256,
              compute_dtype=jnp.bfloat16):
    """NT-Xent loss of _GInfoMinMax.calc_loss, streamed block by block (the
    B x B similarity matrix is never materialized)."""
    assert block_q % block_k == 0 and block_q % 128 == 0 and block_k % 128 == 0
    t = float(temperature)
    # exp(sim/T) is taken without a running-max shift (matches the reference);
    # |sim| <= 1 so it stays finite in f32 as long as T is not absurdly small.
    assert t >= 1.0 / 80.0, "temperature too small for unshifted exp in float32"

    B, D = x.shape
    Dp = _round_up(D, 128)
    if B <= block_k:
        TQ = TK = Bp = _round_up(B, 8)
    elif B <= block_q:
        Bp = _round_up(B, block_k)
        TQ, TK = Bp, block_k
    else:
        Bp = _round_up(B, block_q)
        TQ, TK = block_q, block_k
    gi, gj = Bp // TQ, Bp // TK
    masked = Bp != B

    # O(B*D) wrapper work: row-normalize, fold 1/sqrt(T) into both sides, pad,
    # and cast the MXU operands (f32 accumulation happens in-kernel).
    eps = 1e-12   # zero-norm (e.g. padded) rows; the torch reference would NaN.
    inv_sqrt_t = 1.0 / np.sqrt(t)
    xf = x.astype(jnp.float32)
    xaf = x_aug.astype(jnp.float32)
    xn = xf * (inv_sqrt_t / jnp.maximum(
        jnp.sqrt(jnp.sum(xf * xf, axis=1, keepdims=True)), eps))
    xan = xaf * (inv_sqrt_t / jnp.maximum(
        jnp.sqrt(jnp.sum(xaf * xaf, axis=1, keepdims=True)), eps))
    pad = ((0, Bp - B), (0, Dp - D))
    xn = jnp.pad(xn, pad).astype(compute_dtype)
    xan = jnp.pad(xan, pad).astype(compute_dtype)

    if sym:   # dir 0: rows of sim(x, x_aug) = loss_1; dir 1: rows of sim(x_aug, x) = loss_0
        q = jnp.stack([xn, xan])
        k = jnp.stack([xan, xn])
    else:
        q = xn[None]
        k = xan[None]
    ndir = q.shape[0]

    valid = (jnp.arange(Bp) < B).astype(jnp.float32)
    cmask = valid[None, :]                     # (1, Bp) key-column validity
    rmask = valid[:, None]                     # (Bp, 1) query-row validity

    kernel = functools.partial(_ntxent_kernel, masked=masked)
    terms = pl.pallas_call(
        kernel,
        out_shape=jax.ShapeDtypeStruct((ndir, Bp, 1), jnp.float32),
        grid=(ndir, gi, gj),
        in_specs=[
            pl.BlockSpec((None, TQ, Dp), lambda d, i, j: (d, i, 0)),  # queries (resident over j)
            pl.BlockSpec((None, TK, Dp), lambda d, i, j: (d, j, 0)),  # key stream
            pl.BlockSpec((1, TK), lambda d, i, j: (0, j)),            # column mask
            pl.BlockSpec((TQ, 1), lambda d, i, j: (i, 0)),            # row mask
        ],
        out_specs=pl.BlockSpec((None, TQ, 1), lambda d, i, j: (d, i, 0)),
        scratch_shapes=[
            pltpu.VMEM((TQ, 1), jnp.float32),   # running row sums of exp(sim)
            pltpu.VMEM((TQ, 1), jnp.float32),   # positives (diagonal) accumulator
        ],
        compiler_params=pltpu.CompilerParams(
            # No cross-i / cross-d carries -> both axes split across TCs (v7x);
            # only the key axis j is a reduction.
            dimension_semantics=("parallel", "parallel", "arbitrary"),
            vmem_limit_bytes=48 * 1024 * 1024),
    )(q, k, cmask, rmask)

    per_dir = jnp.sum(terms, axis=(1, 2)) / B     # (ndir,) mean over valid rows
    return jnp.mean(per_dir)


# ----------------------------------------------------------------------------
# Parameter init (matches init_emb: xavier_uniform_ on Linear weight, bias=0)
# ----------------------------------------------------------------------------
def xavier_uniform(key, out_dim, in_dim):
    bound = float(np.sqrt(6.0 / (in_dim + out_dim)))
    # PyTorch Linear weight shape is (out, in)
    return jax.random.uniform(key, (out_dim, in_dim), jnp.float32, -bound, bound)


# ----------------------------------------------------------------------------
# Stand-in encoder (plain JAX glue)
# ----------------------------------------------------------------------------
def simple_encoder(batch, x, edge_index, edge_attr, w_enc, num_graphs,
                   edge_weight=None):
    # TODO(synk): the real GNN encoder is an injected dependency of _GInfoMinMax
    # (not defined in ad_gcl.py); deterministic linear + mean-pool stand-in here.
    del edge_index, edge_attr, edge_weight
    node_emb = jnp.maximum(x @ w_enc, 0.0)                       # [N, out_graph_dim]
    sums = jax.ops.segment_sum(node_emb, batch, num_segments=num_graphs)
    counts = jax.ops.segment_sum(jnp.ones((x.shape[0],), jnp.float32),
                                 batch, num_segments=num_graphs)
    z = sums / jnp.maximum(counts, 1.0)[:, None]                 # [num_graphs, out_graph_dim]
    return z, node_emb


# ----------------------------------------------------------------------------
# Full module forward:  z, node_emb = encoder(...);  z = proj_head(z)
# ----------------------------------------------------------------------------
def ginfominmax_forward(params, batch, x, edge_index, edge_attr, num_graphs,
                        edge_weight=None):
    z, node_emb = simple_encoder(batch, x, edge_index, edge_attr,
                                 params["w_enc"], num_graphs, edge_weight)
    # Weights/biases are stored pre-transposed / pre-shaped once at init, so the
    # wrapper is a pure pass-through (no per-call transposes).
    z = proj_head(z, params["w1"], params["b1"], params["w2"], params["b2"])
    return z, node_emb


if __name__ == "__main__":
    key = jax.random.PRNGKey(0)
    k_enc, k_w1, k_w2, kx, kb, ka, ke, kz2 = jax.random.split(key, 8)

    # small shapes
    num_graphs = 8          # graphs in the batch
    num_nodes = 32          # total nodes
    num_edges = 64
    node_feat_dim = 16
    out_graph_dim = 32      # encoder.out_graph_dim -> input_proj_dim
    proj_hidden_dim = 32

    w1_pt = xavier_uniform(k_w1, proj_hidden_dim, out_graph_dim)     # torch (out,in)
    w2_pt = xavier_uniform(k_w2, proj_hidden_dim, proj_hidden_dim)
    params = {
        "w_enc": jax.random.normal(k_enc, (node_feat_dim, out_graph_dim),
                                   jnp.float32) * 0.1,
        # stored pre-transposed ((in,out)) once; biases stored as (1,H)
        "w1": w1_pt.T, "b1": jnp.zeros((1, proj_hidden_dim), jnp.float32),
        "w2": w2_pt.T, "b2": jnp.zeros((1, proj_hidden_dim), jnp.float32),
    }

    # deterministic example graph batch
    x = jax.random.normal(kx, (num_nodes, node_feat_dim), jnp.float32)
    batch = jnp.sort(jax.random.randint(kb, (num_nodes,), 0, num_graphs))
    edge_index = jax.random.randint(ka, (2, num_edges), 0, num_nodes)
    edge_attr = jax.random.normal(ke, (num_edges, 4), jnp.float32)

    # forward (bf16 MXU path by default)
    z, node_emb = ginfominmax_forward(params, batch, x, edge_index, edge_attr,
                                      num_graphs)
    z = jax.block_until_ready(z)
    node_emb = jax.block_until_ready(node_emb)

    # reference projection head
    z_enc, _ = simple_encoder(batch, x, edge_index, edge_attr,
                              params["w_enc"], num_graphs)
    h_ref = jnp.maximum(z_enc @ params["w1"] + params["b1"], 0.0)
    z_ref = h_ref @ params["w2"] + params["b2"]
    np.testing.assert_allclose(np.asarray(z), np.asarray(z_ref),
                               rtol=2e-2, atol=2e-2)            # bf16 MXU path
    z_f32 = jax.block_until_ready(
        proj_head(z_enc, params["w1"], params["b1"], params["w2"], params["b2"],
                  compute_dtype=jnp.float32))
    np.testing.assert_allclose(np.asarray(z_f32), np.asarray(z_ref),
                               rtol=1e-5, atol=1e-5)            # exact-path check

    # numpy reference for the loss
    def np_loss(a, b, temperature=0.2, sym=True):
        a = np.asarray(a, np.float64)
        b = np.asarray(b, np.float64)
        na = np.linalg.norm(a, axis=1)
        nb = np.linalg.norm(b, axis=1)
        sim = np.exp((a @ b.T) / np.outer(na, nb) / temperature)
        pos = np.diag(sim)
        l1 = -np.log(pos / (sim.sum(axis=1) - pos)).mean()
        if not sym:
            return l1
        l0 = -np.log(pos / (sim.sum(axis=0) - pos)).mean()
        return (l0 + l1) / 2.0

    # loss check 1: small batch (single tile), f32 operands -> tight tolerance
    z_aug = z + 0.05 * jax.random.normal(kz2, z.shape, jnp.float32)
    loss = jax.block_until_ready(
        calc_loss(z, z_aug, temperature=0.2, sym=True, compute_dtype=jnp.float32))
    np.testing.assert_allclose(float(loss), np_loss(z, z_aug),
                               rtol=1e-4, atol=1e-5)

    # loss check 2: padded batch/features (B=300 -> 512, D=96 -> 128),
    # TQ=512 / TK=256 tiles, f32 operands
    kb1, kb2 = jax.random.split(jax.random.PRNGKey(1))
    xb = jax.random.normal(kb1, (300, 96), jnp.float32)
    xab = xb + 0.1 * jax.random.normal(kb2, (300, 96), jnp.float32)
    loss_big = jax.block_until_ready(
        calc_loss(xb, xab, temperature=0.2, sym=True, compute_dtype=jnp.float32))
    np.testing.assert_allclose(float(loss_big), np_loss(xb, xab),
                               rtol=1e-4, atol=1e-5)

    # loss check 3: multi-block query grid with TQ != TK (diag spans 2 key blocks)
    loss_big2 = jax.block_until_ready(
        calc_loss(xb, xab, temperature=0.2, sym=True, block_q=256, block_k=128,
                  compute_dtype=jnp.float32))
    np.testing.assert_allclose(float(loss_big2), np_loss(xb, xab),
                               rtol=1e-4, atol=1e-5)

    # loss check 4: asymmetric direction, f32 operands
    loss_asym = jax.block_until_ready(
        calc_loss(xb, xab, temperature=0.2, sym=False, compute_dtype=jnp.float32))
    np.testing.assert_allclose(float(loss_asym), np_loss(xb, xab, sym=False),
                               rtol=1e-4, atol=1e-5)

    # loss check 5: default bf16 MXU streaming path (loose tolerance)
    loss_bf16 = jax.block_until_ready(
        calc_loss(xb, xab, temperature=0.2, sym=True))
    np.testing.assert_allclose(float(loss_bf16), np_loss(xb, xab),
                               rtol=5e-2, atol=5e-2)

    print("KERNEL_OK")
</pallas_src>

<mosaic_0001>
module attributes {stable_mosaic.version = 11 : i64} {
  func.func @_proj_head_kernel(%arg0: i32, %arg1: memref<8x128xbf16, #tpu.memory_space<vmem>>, %arg2: memref<128x128xbf16, #tpu.memory_space<vmem>>, %arg3: memref<1x128xf32, #tpu.memory_space<vmem>>, %arg4: memref<128x128xbf16, #tpu.memory_space<vmem>>, %arg5: memref<1x128xf32, #tpu.memory_space<vmem>>, %arg6: memref<8x128xf32, #tpu.memory_space<vmem>>) attributes {dimension_semantics = [#tpu.dimension_semantics<parallel>], iteration_bounds = array<i64: 1>, scalar_prefetch = 0 : i64, scratch_operands = 0 : i64, tpu.core_type = #tpu.core_type<tc>, window_params = [{transform_indices = @transform_0, window_bounds = array<i64: 8, 128>}, {pipeline_mode = #tpu.pipeline_mode<synchronous>, transform_indices = @transform_1, window_bounds = array<i64: 128, 128>}, {pipeline_mode = #tpu.pipeline_mode<synchronous>, transform_indices = @transform_2, window_bounds = array<i64: 1, 128>}, {pipeline_mode = #tpu.pipeline_mode<synchronous>, transform_indices = @transform_3, window_bounds = array<i64: 128, 128>}, {pipeline_mode = #tpu.pipeline_mode<synchronous>, transform_indices = @transform_4, window_bounds = array<i64: 1, 128>}, {transform_indices = @transform_5, window_bounds = array<i64: 8, 128>}]} {
    %c0 = arith.constant 0 : index
    %c0_0 = arith.constant 0 : index
    %0 = vector.load %arg1[%c0, %c0_0] : memref<8x128xbf16, #tpu.memory_space<vmem>>, vector<8x128xbf16>
    %c0_1 = arith.constant 0 : index
    %c0_2 = arith.constant 0 : index
    %1 = vector.load %arg2[%c0_1, %c0_2] : memref<128x128xbf16, #tpu.memory_space<vmem>>, vector<128x128xbf16>
    %cst = arith.constant dense<0.000000e+00> : vector<8x128xf32>
    %2 = tpu.matmul %0, %1, %cst {dimension_numbers = #tpu.dot_dimension_numbers<[1], [0], [0], [1], [0, 0, 1, 1], [], []>} : vector<8x128xbf16>, vector<128x128xbf16>, vector<8x128xf32> -> vector<8x128xf32>
    %c0_3 = arith.constant 0 : index
    %c0_4 = arith.constant 0 : index
    %3 = vector.load %arg3[%c0_3, %c0_4] : memref<1x128xf32, #tpu.memory_space<vmem>>, vector<1x128xf32>
    %4 = vector.broadcast %3 : vector<1x128xf32> to vector<8x128xf32>
    %5 = arith.addf %2, %4 : vector<8x128xf32>
    %cst_5 = arith.constant 0.000000e+00 : f32
    %6 = vector.broadcast %cst_5 : f32 to vector<8x128xf32>
    %7 = arith.maximumf %5, %6 : vector<8x128xf32>
    %8 = arith.truncf %7 : vector<8x128xf32> to vector<8x128xbf16>
    %c0_6 = arith.constant 0 : index
    %c0_7 = arith.constant 0 : index
    %9 = vector.load %arg4[%c0_6, %c0_7] : memref<128x128xbf16, #tpu.memory_space<vmem>>, vector<128x128xbf16>
    %cst_8 = arith.constant dense<0.000000e+00> : vector<8x128xf32>
    %10 = tpu.matmul %8, %9, %cst_8 {dimension_numbers = #tpu.dot_dimension_numbers<[1], [0], [0], [1], [0, 0, 1, 1], [], []>} : vector<8x128xbf16>, vector<128x128xbf16>, vector<8x128xf32> -> vector<8x128xf32>
    %c0_9 = arith.constant 0 : index
    %c0_10 = arith.constant 0 : index
    %11 = vector.load %arg5[%c0_9, %c0_10] : memref<1x128xf32, #tpu.memory_space<vmem>>, vector<1x128xf32>
    %12 = vector.broadcast %11 : vector<1x128xf32> to vector<8x128xf32>
    %13 = arith.addf %10, %12 : vector<8x128xf32>
    %c0_11 = arith.constant 0 : index
    %c0_12 = arith.constant 0 : index
    %14 = vector.load %arg6[%c0_11, %c0_12] : memref<8x128xf32, #tpu.memory_space<vmem>>, vector<8x128xf32>
    tpu.vector_store %arg6[%c0_11, %c0_12], %13 {strides = array<i32>} : memref<8x128xf32, #tpu.memory_space<vmem>>, vector<8x128xf32>,
    return
  }
  func.func @transform_0(%arg0: i32) -> (i32, i32) {
    %c0_i32 = arith.constant 0 : i32
    %c0_i32_0 = arith.constant 0 : i32
    return %arg0, %c0_i32 : i32, i32
  }
  func.func @transform_1(%arg0: i32) -> (i32, i32) {
    %c0_i32 = arith.constant 0 : i32
    %c0_i32_0 = arith.constant 0 : i32
    %c0_i32_1 = arith.constant 0 : i32
    return %c0_i32, %c0_i32_0 : i32, i32
  }
  func.func @transform_2(%arg0: i32) -> (i32, i32) {
    %c0_i32 = arith.constant 0 : i32
    %c0_i32_0 = arith.constant 0 : i32
    %c0_i32_1 = arith.constant 0 : i32
    return %c0_i32, %c0_i32_0 : i32, i32
  }
  func.func @transform_3(%arg0: i32) -> (i32, i32) {
    %c0_i32 = arith.constant 0 : i32
    %c0_i32_0 = arith.constant 0 : i32
    %c0_i32_1 = arith.constant 0 : i32
    return %c0_i32, %c0_i32_0 : i32, i32
  }
  func.func @transform_4(%arg0: i32) -> (i32, i32) {
    %c0_i32 = arith.constant 0 : i32
    %c0_i32_0 = arith.constant 0 : i32
    %c0_i32_1 = arith.constant 0 : i32
    return %c0_i32, %c0_i32_0 : i32, i32
  }
  func.func @transform_5(%arg0: i32) -> (i32, i32) {
    %c0_i32 = arith.constant 0 : i32
    %c0_i32_0 = arith.constant 0 : i32
    return %arg0, %c0_i32 : i32, i32
  }
}

</mosaic_0001>

<bundles_post_ra>
// kernel: tpu_custom_call.1
= control target key start
LH: loop header
LB: loop body
LE: loop exit
PB: predicated region body
PF: predicated region fallthrough
CT: control target
= control target key end

     0   :  { %10 = vsyncpa [#allocation3], 0  ;;  %s494_s0 = inlined_call_operand.hbm [shape: bf16[8,128], index: 0, kind: input, shape index: {}]   ;;  %s495_s1 = inlined_call_operand.hbm [shape: bf16[128,128], index: 1, kind: input, shape index: {}]   ;;  %s496_s2 = inlined_call_operand.vmem [shape: f32[1,128], index: 2, kind: input, shape index: {}]   ;;  %s497_s3 = inlined_call_operand.hbm [shape: bf16[128,128], index: 3, kind: input, shape index: {}]   ;;  %s498_s4 = inlined_call_operand.vmem [shape: f32[1,128], index: 4, kind: input, shape index: {}]   ;;  %s499_s5 = inlined_call_operand.hbm [shape: f32[8,128], index: 5, kind: output, shape index: {}]  }
   0x1   :  { %11 = vsyncpa [#allocation6], 0  ;;  %s28_s20 = sshll.u32 %s495_s1, 4  ;;  %s29_s20 = int_to_ptr.hbm [resolvable:$true] %s28_s20 }
   0x2   :  { %12 = vsyncpa [#allocation4], 0  ;;  %s440_s21 = smov [#allocation5]   ;;  %s18_s25 = sshll.u32 %s494_s0, 4  ;;  %s19_s25 = int_to_ptr.hbm [resolvable:$true] %s18_s25 }
   0x3   :  { %s30_s22 = sshll.u32 %s440_s21, 4  ;;  %s441_s26 = smov 64   ;;  %s31_s22 = int_to_ptr.vmem [resolvable:$true] %s30_s22 }
   0x4   :  { %s442_s27 = smov 4   ;;  %s443_s28 = smov [#allocation2]  }
   0x5   :  { %36 = dma.hbm_to_vmem [thread:$0]  %s29_s20, 1024, %s31_s22, [#allocation6], %s441_s26, %s441_s26, %s442_s27  }
   0x6   :  { %s20_s29 = sshll.u32 %s443_s28, 4  ;;  %s43_s7 = sshll.u32 %s497_s3, 4  ;;  %s21_s29 = int_to_ptr.vmem [resolvable:$true] %s20_s29  ;;  %s44_s7 = int_to_ptr.hbm [resolvable:$true] %s43_s7 }
   0x7   :  { %23 = dma.hbm_to_vmem [thread:$0]  %s19_s25, 64, %s21_s29, [#allocation3]  }
   0x8   :  { %s444_s1 = smov [#allocation7]  }
   0x9   :  { %s45_s8 = sshll.u32 %s444_s1, 4  ;;  %s46_s8 = int_to_ptr.vmem [resolvable:$true] %s45_s8 }
   0xa   :  { %51 = dma.hbm_to_vmem [thread:$0]  %s44_s7, 1024, %s46_s8, [#allocation6], %s441_s26, %s441_s26, %s442_s27  }
   0xb   :  { %434 = dma.done.wait [#allocation3], 64  }
   0xc   :  { %435 = vsyncadd [#allocation3], 4294967232 }
   0xd   :  { %436 = dma.done.wait [#allocation6], 2048  }
   0xe   :  { %437 = vsyncadd [#allocation6], 4294965248  ;;  %v321_v0 = vld [vmem:[#allocation5 + $0x38] sm:$0xff]  ;;  %v320_v1 = vld [vmem:[#allocation5 + $0x30] sm:$0xff]  ;;  %s445_s11 = smov [#allocation8]   ;;  %s239_s15 = sshll.u32 %s499_s5, 4  ;;  %s240_s15 = int_to_ptr.hbm [resolvable:$true] %s239_s15 }
   0xf   :  { %135 = vmatpush.bf16.msra.mxu0 %v321_v0  ;;  %v329_v2 = vld [vmem:[#allocation7 + $0x38] sm:$0xff]  ;;  %v328_v3 = vld [vmem:[#allocation7 + $0x30] sm:$0xff]  ;;  %v319_v4 = vld [vmem:[#allocation5 + $0x28] sm:$0xff]  ;;  %s237_s12 = sshll.u32 %s445_s11, 4  ;;  %s238_s12 = int_to_ptr.vmem [resolvable:$true] %s237_s12 }
  0x10   :  { %218 = vmatpush.bf16.msra.mxu1 %v329_v2  ;;  %v327_v5 = vld [vmem:[#allocation7 + $0x28] sm:$0xff]  ;;  %v318_v6 = vld [vmem:[#allocation5 + $0x20] sm:$0xff]  ;;  %v317_v8 = vld [vmem:[#allocation5 + $0x18] sm:$0xff] }
  0x11   :  { %v326_v7 = vld [vmem:[#allocation7 + $0x20] sm:$0xff]  ;;  %v325_v9 = vld [vmem:[#allocation7 + $0x18] sm:$0xff]  ;;  %v316_v10 = vld [vmem:[#allocation5 + $0x10] sm:$0xff] }
  0x12   :  { %v324_v11 = vld [vmem:[#allocation7 + $0x10] sm:$0xff]  ;;  %v315_v12 = vld [vmem:[#allocation5 + $0x8] sm:$0xff]  ;;  %v314_v13 = vld [vmem:[#allocation5] sm:$0xff] }
  0x13   :  { %136 = vmatpush.bf16.msra.mxu0 %v320_v1  ;;  %v66_v14 = vld [vmem:[#allocation2] sm:$0xf]  ;;  %v323_v15 = vld [vmem:[#allocation7 + $0x8] sm:$0xff]  ;;  %v322_v16 = vld [vmem:[#allocation7] sm:$0xff] }
  0x14   :  { %219 = vmatpush.bf16.msra.mxu1 %v328_v3  ;;  %v336_v17 = vld [vmem:[%s496_s2] ss:$0 sm:$0xff] }
  0x15   :  { %v337_v23 = vld [vmem:[%s498_s4] ss:$0 sm:$0xff] }
  0x17   :  { %137 = vmatpush.bf16.msra.mxu0 %v319_v4 }
  0x18   :  { %220 = vmatpush.bf16.msra.mxu1 %v327_v5 }
  0x1b   :  { %138 = vmatpush.bf16.msra.mxu0 %v318_v6 }
  0x1c   :  { %221 = vmatpush.bf16.msra.mxu1 %v326_v7 }
  0x1f   :  { %139 = vmatpush.bf16.msra.mxu0 %v317_v8 }
  0x20   :  { %222 = vmatpush.bf16.msra.mxu1 %v325_v9 }
  0x23   :  { %140 = vmatpush.bf16.msra.mxu0 %v316_v10 }
  0x24   :  { %223 = vmatpush.bf16.msra.mxu1 %v324_v11 }
  0x27   :  { %141 = vmatpush.bf16.msra.mxu0 %v315_v12 }
  0x28   :  { %224 = vmatpush.bf16.msra.mxu1 %v323_v15 }
  0x2b   :  { %142 = vmatpush.bf16.msra.mxu0 %v314_v13 }
  0x2c   :  { %225 = vmatpush.bf16.msra.mxu1 %v322_v16 }
  0x2e   :  { %143 = vmatmul.bf16.vlgmr.msra.gmra.mxu0 %v66_v14 }
  0xab   :  { %v144_v18 = vpop.f32.mrf.mxu0 }
  0xac   :  { %v145_v19 = vadd.f32 %v336_v17, %v144_v18 }
  0xae   :  { %v148_v20 = vmax.f32 %v145_v19, 0.0 }
  0xb0   :  { %v149_v21 = vpack.c.bf16 %v148_v20, %v148_v20 }
  0xb2   :  { %226 = vmatmul.bf16.vlgmr.msra.gmra.mxu1 %v149_v21 }
  0xb3   :  { %v146_v22 = vpop.f32.mrf.mxu0 }
 0x12f   :  { %v227_v24 = vpop.f32.mrf.mxu1 }
 0x130   :  { %v228_v25 = vadd.f32 %v337_v23, %v227_v24 }
 0x132   :  { %231 = vst [vmem:[#allocation8] sm:$0xff] %v228_v25 }
 0x133   :  { %242 = dma.vmem_to_hbm [thread:$0]  %s238_s12, 128, %s240_s15, [#allocation4]  }
 0x137   :  { %v229_v26 = vpop.f32.mrf.mxu1 }
 0x138   :  { %438 = dma.done.wait [#allocation4], 128  }
 0x139   :  { %439 = vsyncadd [#allocation4], 4294967168 }
 0x13a   :  { %247 = vsyncpa [#allocation3], 1 }
 0x13b   :  { %248 = vsyncpa [#allocation6], 1 }
 0x13c   :  { %249 = vsyncpa [#allocation4], 1 }

</bundles_post_ra>
